<compile_context>
chip_gen: v6e
topology: v6e:2x2x1
jax: 0.10.0
libtpu: 0.0.40
codegen_flags: <defaults>
</compile_context>

<pallas_src>
import functools
import math

import jax
import jax.numpy as jnp
from jax import lax
from jax.experimental import pallas as pl
from jax.experimental.pallas import tpu as pltpu


# ---------------------------------------------------------------------------
# Fused kernel: multi-head attention (all heads) + output projection, per batch
# ---------------------------------------------------------------------------
def _fused_attn_fc_kernel(q_ref, kv_ref, bias_ref, w_ref, b_ref, o_ref,
                          concat_ref, *, heads, head_dim, inv_scale):
    # q_ref:      (1, Q, E)   query rows for this batch
    # kv_ref:     (1, S, E)   values rows (serve as BOTH keys and values,
    #                         matching the reference `keys = values.reshape`)
    # bias_ref:   (1, Q, K)   additive, pre-scaled mask bias (shared by heads)
    # w_ref:      (H*D, E)    fc_output weight (already transposed to in,out)
    # b_ref:      (1, E)      fc_output bias
    # o_ref:      (1, Q, E)   output rows for this batch
    # concat_ref: (Q, H*D)    VMEM scratch holding all head outputs
    kv = kv_ref[0]                                      # (S, E)
    bias = bias_ref[0]                                  # (Q, K), already * 1/scale
    # Fold the 1/sqrt(embed_size) scale into q once (Q*E muls instead of
    # H*Q*K muls per batch).
    q = q_ref[0] * jnp.float32(inv_scale)               # (Q, E)

    for h in range(heads):                              # static unroll, H small
        lo = h * head_dim
        q_h = q[:, lo:lo + head_dim]                    # (Q, D)
        kv_h = kv[:, lo:lo + head_dim]                  # (K, D) == (V, D)

        # energy*1/scale = (q*1/scale) @ k^T, without materializing k^T:
        # contract the last dim of both operands on the MXU.
        logits = lax.dot_general(
            q_h, kv_h, (((1,), (1,)), ((), ())),
            preferred_element_type=jnp.float32) + bias  # masked-fill + scale

        # numerically stable softmax over the key axis
        logits = logits - jnp.max(logits, axis=-1, keepdims=True)
        p = jnp.exp(logits)
        p = p * pl.reciprocal(jnp.sum(p, axis=-1, keepdims=True), approx=True)

        # out_h = attn @ v_h (MXU); write into the (Q, H*D) VMEM scratch
        # instead of a lane-axis concatenate.
        concat_ref[:, lo:lo + head_dim] = jnp.dot(
            p, kv_h, preferred_element_type=jnp.float32)

    # fc_output: (Q, H*D) @ (H*D, E) + bias, fused in the same kernel with the
    # full H*D contraction depth.
    y = jnp.dot(concat_ref[...], w_ref[...],
                preferred_element_type=jnp.float32) + b_ref[...]
    o_ref[0] = y.astype(o_ref.dtype)


# ---------------------------------------------------------------------------
# Wrapper
# ---------------------------------------------------------------------------
def self_attention_forward(values, keys, query, mask, fc_w, fc_b,
                           *, embed_size, heads):
    N, v_len, E = values.shape
    k_len = keys.shape[1]
    q_len = query.shape[1]
    H = heads
    D = E // H
    assert D * H == E, "embed_size must be divisible by heads"
    # In the reference, keys are produced by reshaping `values`, so the key
    # length is effectively the value length.
    assert k_len == v_len, "reference semantics require key_len == value_len"

    scale = float(embed_size) ** 0.5
    inv_scale = 1.0 / scale

    # PyTorch Linear stores weight as (out, in); kernel consumes (in, out).
    w_t = fc_w.T                                  # (H*D, E)
    b2 = fc_b.reshape(1, E)

    # Precompute the additive, pre-scaled mask bias once in the wrapper
    # (drops the in-kernel compare+select and the int32 widening); one (Q, K)
    # tile per batch, shared by every head.
    mask_b = jnp.broadcast_to(mask, (N, 1, q_len, v_len))[:, 0]      # (N, Q, K)
    bias = jnp.where(mask_b == 0, jnp.float32(-1e20),
                     jnp.float32(0.0)) * jnp.float32(inv_scale)      # (N, Q, K) f32

    out = pl.pallas_call(
        functools.partial(_fused_attn_fc_kernel,
                          heads=H, head_dim=D, inv_scale=inv_scale),
        out_shape=jax.ShapeDtypeStruct((N, q_len, E), query.dtype),
        grid=(N,),
        in_specs=[
            pl.BlockSpec((1, q_len, E), lambda n: (n, 0, 0)),        # query
            pl.BlockSpec((1, v_len, E), lambda n: (n, 0, 0)),        # values (=keys)
            pl.BlockSpec((1, q_len, v_len), lambda n: (n, 0, 0)),    # mask bias
            pl.BlockSpec((H * D, E), lambda n: (0, 0)),              # fc weight^T
            pl.BlockSpec((1, E), lambda n: (0, 0)),                  # fc bias
        ],
        out_specs=pl.BlockSpec((1, q_len, E), lambda n: (n, 0, 0)),
        scratch_shapes=[pltpu.VMEM((q_len, H * D), jnp.float32)],    # head concat
        compiler_params=pltpu.CompilerParams(
            dimension_semantics=("parallel",)),
    )(query, values, bias, w_t, b2)
    return out


# ---------------------------------------------------------------------------
# Pure-JAX reference (mirrors the PyTorch forward) for a correctness check.
# ---------------------------------------------------------------------------
def _reference_forward(values, keys, query, mask, fc_w, fc_b, *, embed_size, heads):
    N, v_len, E = values.shape
    k_len = keys.shape[1]
    q_len = query.shape[1]
    H = heads
    D = E // H
    v4 = values.reshape(N, v_len, H, D)
    k4 = v4.reshape(N, k_len, H, D)          # keys = values.reshape(...)
    q4 = query.reshape(N, q_len, H, D)
    energy = jnp.einsum('nqhd,nkhd->nhqk', q4, k4)
    energy = jnp.where(mask == 0, jnp.float32(-1e20), energy)
    attn = jax.nn.softmax(energy / (embed_size ** 0.5), axis=3)
    out = jnp.einsum('nhql,nlhd->nqhd', attn, v4).reshape(N, q_len, H * D)
    return out @ fc_w.T + fc_b


# ---------------------------------------------------------------------------
# Demo
# ---------------------------------------------------------------------------
if __name__ == "__main__":
    N = 2           # batch
    SEQ = 8         # value_len == key_len == query_len
    EMBED = 32      # embed_size
    HEADS = 4       # heads  (head_dim = 8)

    key = jax.random.PRNGKey(0)
    k_v, k_k, k_q, k_w, k_b, k_m = jax.random.split(key, 6)

    values = jax.random.normal(k_v, (N, SEQ, EMBED), dtype=jnp.float32)
    keys_in = jax.random.normal(k_k, (N, SEQ, EMBED), dtype=jnp.float32)
    query = jax.random.normal(k_q, (N, SEQ, EMBED), dtype=jnp.float32)

    # fc_output parameters (PyTorch Linear layout: weight (out, in), bias (out,))
    bound = 1.0 / math.sqrt(EMBED)
    fc_w = jax.random.uniform(k_w, (EMBED, EMBED), jnp.float32, -bound, bound)
    fc_b = jax.random.uniform(k_b, (EMBED,), jnp.float32, -bound, bound)

    # mask: (N, 1, Q, K) of {0, 1}, broadcast over heads exactly like masked_fill
    mask = (jax.random.uniform(k_m, (N, 1, SEQ, SEQ)) > 0.2).astype(jnp.int32)
    # guarantee every query row attends to at least the first key
    mask = mask.at[:, :, :, 0].set(1)

    out = self_attention_forward(values, keys_in, query, mask, fc_w, fc_b,
                                 embed_size=EMBED, heads=HEADS)
    out = jax.block_until_ready(out)

    ref = _reference_forward(values, keys_in, query, mask, fc_w, fc_b,
                             embed_size=EMBED, heads=HEADS)
    assert out.shape == (N, SEQ, EMBED)
    # Tolerance accounts for the EUP approximate-reciprocal softmax denominator.
    assert jnp.allclose(out, ref, atol=2e-3, rtol=2e-3), "mismatch vs reference"

    print("KERNEL_OK")
</pallas_src>

<mosaic_0001>
module attributes {stable_mosaic.version = 11 : i64} {
  func.func @_fused_attn_fc_kernel(%arg0: i32, %arg1: memref<1x8x32xf32, #tpu.memory_space<vmem>>, %arg2: memref<1x8x32xf32, #tpu.memory_space<vmem>>, %arg3: memref<1x8x8xf32, #tpu.memory_space<vmem>>, %arg4: memref<32x32xf32, #tpu.memory_space<vmem>>, %arg5: memref<1x32xf32, #tpu.memory_space<vmem>>, %arg6: memref<1x8x32xf32, #tpu.memory_space<vmem>>, %arg7: memref<8x32xf32, #tpu.memory_space<vmem>>) attributes {dimension_semantics = [#tpu.dimension_semantics<parallel>], iteration_bounds = array<i64: 2>, scalar_prefetch = 0 : i64, scratch_operands = 1 : i64, tpu.core_type = #tpu.core_type<tc>, window_params = [{transform_indices = @transform_0, window_bounds = array<i64: 1, 8, 32>}, {transform_indices = @transform_1, window_bounds = array<i64: 1, 8, 32>}, {transform_indices = @transform_2, window_bounds = array<i64: 1, 8, 8>}, {pipeline_mode = #tpu.pipeline_mode<synchronous>, transform_indices = @transform_3, window_bounds = array<i64: 32, 32>}, {pipeline_mode = #tpu.pipeline_mode<synchronous>, transform_indices = @transform_4, window_bounds = array<i64: 1, 32>}, {transform_indices = @transform_5, window_bounds = array<i64: 1, 8, 32>}]} {
    %c0 = arith.constant 0 : index
    %c0_0 = arith.constant 0 : index
    %c0_1 = arith.constant 0 : index
    %0 = vector.load %arg2[%c0, %c0_0, %c0_1] : memref<1x8x32xf32, #tpu.memory_space<vmem>>, vector<1x8x32xf32>
    %1 = vector.shape_cast %0 : vector<1x8x32xf32> to vector<8x32xf32>
    %c0_2 = arith.constant 0 : index
    %c0_3 = arith.constant 0 : index
    %c0_4 = arith.constant 0 : index
    %2 = vector.load %arg3[%c0_2, %c0_3, %c0_4] : memref<1x8x8xf32, #tpu.memory_space<vmem>>, vector<1x8x8xf32>
    %3 = vector.shape_cast %2 : vector<1x8x8xf32> to vector<8x8xf32>
    %c0_5 = arith.constant 0 : index
    %c0_6 = arith.constant 0 : index
    %c0_7 = arith.constant 0 : index
    %4 = vector.load %arg1[%c0_5, %c0_6, %c0_7] : memref<1x8x32xf32, #tpu.memory_space<vmem>>, vector<1x8x32xf32>
    %5 = vector.shape_cast %4 : vector<1x8x32xf32> to vector<8x32xf32>
    %cst = arith.constant 0.176776692 : f32
    %6 = vector.broadcast %cst : f32 to vector<8x32xf32>
    %7 = arith.mulf %5, %6 : vector<8x32xf32>
    %8 = vector.extract_strided_slice %7 {offsets = [0, 0], sizes = [8, 8], strides = [1, 1]} : vector<8x32xf32> to vector<8x8xf32>
    %9 = vector.extract_strided_slice %1 {offsets = [0, 0], sizes = [8, 8], strides = [1, 1]} : vector<8x32xf32> to vector<8x8xf32>
    %cst_8 = arith.constant dense<0.000000e+00> : vector<8x8xf32>
    %10 = tpu.matmul %8, %9, %cst_8 {dimension_numbers = #tpu.dot_dimension_numbers<[1], [1], [0], [0], [0, 0, 1, 0], [], []>} : vector<8x8xf32>, vector<8x8xf32>, vector<8x8xf32> -> vector<8x8xf32>
    %11 = arith.addf %10, %3 : vector<8x8xf32>
    %cst_9 = arith.constant dense<0xFF800000> : vector<8xf32>
    %12 = vector.multi_reduction <maximumf>, %11, %cst_9 [1] : vector<8x8xf32> to vector<8xf32>
    %13 = vector.shape_cast %12 : vector<8xf32> to vector<8x1xf32>
    %14 = vector.broadcast %13 : vector<8x1xf32> to vector<8x8xf32>
    %15 = arith.subf %11, %14 : vector<8x8xf32>
    %16 = math.exp %15 : vector<8x8xf32>
    %cst_10 = arith.constant dense<0.000000e+00> : vector<8xf32>
    %17 = vector.multi_reduction <add>, %16, %cst_10 [1] : vector<8x8xf32> to vector<8xf32>
    %18 = vector.shape_cast %17 : vector<8xf32> to vector<8x1xf32>
    %19 = tpu.reciprocal %18 {approx = true} : vector<8x1xf32> -> vector<8x1xf32>
    %20 = vector.broadcast %19 : vector<8x1xf32> to vector<8x8xf32>
    %21 = arith.mulf %16, %20 : vector<8x8xf32>
    %cst_11 = arith.constant dense<0.000000e+00> : vector<8x8xf32>
    %22 = tpu.matmul %21, %9, %cst_11 {dimension_numbers = #tpu.dot_dimension_numbers<[1], [0], [0], [1], [0, 0, 1, 1], [], []>} : vector<8x8xf32>, vector<8x8xf32>, vector<8x8xf32> -> vector<8x8xf32>
    %c0_12 = arith.constant 0 : index
    %c0_13 = arith.constant 0 : index
    %23 = vector.load %arg7[%c0_12, %c0_13] : memref<8x32xf32, #tpu.memory_space<vmem>>, vector<8x8xf32>
    tpu.vector_store %arg7[%c0_12, %c0_13], %22 {strides = array<i32>} : memref<8x32xf32, #tpu.memory_space<vmem>>, vector<8x8xf32>,
    %24 = vector.extract_strided_slice %7 {offsets = [0, 8], sizes = [8, 8], strides = [1, 1]} : vector<8x32xf32> to vector<8x8xf32>
    %25 = vector.extract_strided_slice %1 {offsets = [0, 8], sizes = [8, 8], strides = [1, 1]} : vector<8x32xf32> to vector<8x8xf32>
    %cst_14 = arith.constant dense<0.000000e+00> : vector<8x8xf32>
    %26 = tpu.matmul %24, %25, %cst_14 {dimension_numbers = #tpu.dot_dimension_numbers<[1], [1], [0], [0], [0, 0, 1, 0], [], []>} : vector<8x8xf32>, vector<8x8xf32>, vector<8x8xf32> -> vector<8x8xf32>
    %27 = arith.addf %26, %3 : vector<8x8xf32>
    %cst_15 = arith.constant dense<0xFF800000> : vector<8xf32>
    %28 = vector.multi_reduction <maximumf>, %27, %cst_15 [1] : vector<8x8xf32> to vector<8xf32>
    %29 = vector.shape_cast %28 : vector<8xf32> to vector<8x1xf32>
    %30 = vector.broadcast %29 : vector<8x1xf32> to vector<8x8xf32>
    %31 = arith.subf %27, %30 : vector<8x8xf32>
    %32 = math.exp %31 : vector<8x8xf32>
    %cst_16 = arith.constant dense<0.000000e+00> : vector<8xf32>
    %33 = vector.multi_reduction <add>, %32, %cst_16 [1] : vector<8x8xf32> to vector<8xf32>
    %34 = vector.shape_cast %33 : vector<8xf32> to vector<8x1xf32>
    %35 = tpu.reciprocal %34 {approx = true} : vector<8x1xf32> -> vector<8x1xf32>
    %36 = vector.broadcast %35 : vector<8x1xf32> to vector<8x8xf32>
    %37 = arith.mulf %32, %36 : vector<8x8xf32>
    %cst_17 = arith.constant dense<0.000000e+00> : vector<8x8xf32>
    %38 = tpu.matmul %37, %25, %cst_17 {dimension_numbers = #tpu.dot_dimension_numbers<[1], [0], [0], [1], [0, 0, 1, 1], [], []>} : vector<8x8xf32>, vector<8x8xf32>, vector<8x8xf32> -> vector<8x8xf32>
    %c0_18 = arith.constant 0 : index
    %c8 = arith.constant 8 : index
    %39 = vector.load %arg7[%c0_18, %c8] : memref<8x32xf32, #tpu.memory_space<vmem>>, vector<8x8xf32>
    tpu.vector_store %arg7[%c0_18, %c8], %38 {strides = array<i32>} : memref<8x32xf32, #tpu.memory_space<vmem>>, vector<8x8xf32>,
    %40 = vector.extract_strided_slice %7 {offsets = [0, 16], sizes = [8, 8], strides = [1, 1]} : vector<8x32xf32> to vector<8x8xf32>
    %41 = vector.extract_strided_slice %1 {offsets = [0, 16], sizes = [8, 8], strides = [1, 1]} : vector<8x32xf32> to vector<8x8xf32>
    %cst_19 = arith.constant dense<0.000000e+00> : vector<8x8xf32>
    %42 = tpu.matmul %40, %41, %cst_19 {dimension_numbers = #tpu.dot_dimension_numbers<[1], [1], [0], [0], [0, 0, 1, 0], [], []>} : vector<8x8xf32>, vector<8x8xf32>, vector<8x8xf32> -> vector<8x8xf32>
    %43 = arith.addf %42, %3 : vector<8x8xf32>
    %cst_20 = arith.constant dense<0xFF800000> : vector<8xf32>
    %44 = vector.multi_reduction <maximumf>, %43, %cst_20 [1] : vector<8x8xf32> to vector<8xf32>
    %45 = vector.shape_cast %44 : vector<8xf32> to vector<8x1xf32>
    %46 = vector.broadcast %45 : vector<8x1xf32> to vector<8x8xf32>
    %47 = arith.subf %43, %46 : vector<8x8xf32>
    %48 = math.exp %47 : vector<8x8xf32>
    %cst_21 = arith.constant dense<0.000000e+00> : vector<8xf32>
    %49 = vector.multi_reduction <add>, %48, %cst_21 [1] : vector<8x8xf32> to vector<8xf32>
    %50 = vector.shape_cast %49 : vector<8xf32> to vector<8x1xf32>
    %51 = tpu.reciprocal %50 {approx = true} : vector<8x1xf32> -> vector<8x1xf32>
    %52 = vector.broadcast %51 : vector<8x1xf32> to vector<8x8xf32>
    %53 = arith.mulf %48, %52 : vector<8x8xf32>
    %cst_22 = arith.constant dense<0.000000e+00> : vector<8x8xf32>
    %54 = tpu.matmul %53, %41, %cst_22 {dimension_numbers = #tpu.dot_dimension_numbers<[1], [0], [0], [1], [0, 0, 1, 1], [], []>} : vector<8x8xf32>, vector<8x8xf32>, vector<8x8xf32> -> vector<8x8xf32>
    %c0_23 = arith.constant 0 : index
    %c16 = arith.constant 16 : index
    %55 = vector.load %arg7[%c0_23, %c16] : memref<8x32xf32, #tpu.memory_space<vmem>>, vector<8x8xf32>
    tpu.vector_store %arg7[%c0_23, %c16], %54 {strides = array<i32>} : memref<8x32xf32, #tpu.memory_space<vmem>>, vector<8x8xf32>,
    %56 = vector.extract_strided_slice %7 {offsets = [0, 24], sizes = [8, 8], strides = [1, 1]} : vector<8x32xf32> to vector<8x8xf32>
    %57 = vector.extract_strided_slice %1 {offsets = [0, 24], sizes = [8, 8], strides = [1, 1]} : vector<8x32xf32> to vector<8x8xf32>
    %cst_24 = arith.constant dense<0.000000e+00> : vector<8x8xf32>
    %58 = tpu.matmul %56, %57, %cst_24 {dimension_numbers = #tpu.dot_dimension_numbers<[1], [1], [0], [0], [0, 0, 1, 0], [], []>} : vector<8x8xf32>, vector<8x8xf32>, vector<8x8xf32> -> vector<8x8xf32>
    %59 = arith.addf %58, %3 : vector<8x8xf32>
    %cst_25 = arith.constant dense<0xFF800000> : vector<8xf32>
    %60 = vector.multi_reduction <maximumf>, %59, %cst_25 [1] : vector<8x8xf32> to vector<8xf32>
    %61 = vector.shape_cast %60 : vector<8xf32> to vector<8x1xf32>
    %62 = vector.broadcast %61 : vector<8x1xf32> to vector<8x8xf32>
    %63 = arith.subf %59, %62 : vector<8x8xf32>
    %64 = math.exp %63 : vector<8x8xf32>
    %cst_26 = arith.constant dense<0.000000e+00> : vector<8xf32>
    %65 = vector.multi_reduction <add>, %64, %cst_26 [1] : vector<8x8xf32> to vector<8xf32>
    %66 = vector.shape_cast %65 : vector<8xf32> to vector<8x1xf32>
    %67 = tpu.reciprocal %66 {approx = true} : vector<8x1xf32> -> vector<8x1xf32>
    %68 = vector.broadcast %67 : vector<8x1xf32> to vector<8x8xf32>
    %69 = arith.mulf %64, %68 : vector<8x8xf32>
    %cst_27 = arith.constant dense<0.000000e+00> : vector<8x8xf32>
    %70 = tpu.matmul %69, %57, %cst_27 {dimension_numbers = #tpu.dot_dimension_numbers<[1], [0], [0], [1], [0, 0, 1, 1], [], []>} : vector<8x8xf32>, vector<8x8xf32>, vector<8x8xf32> -> vector<8x8xf32>
    %c0_28 = arith.constant 0 : index
    %c24 = arith.constant 24 : index
    %71 = vector.load %arg7[%c0_28, %c24] : memref<8x32xf32, #tpu.memory_space<vmem>>, vector<8x8xf32>
    tpu.vector_store %arg7[%c0_28, %c24], %70 {strides = array<i32>} : memref<8x32xf32, #tpu.memory_space<vmem>>, vector<8x8xf32>,
    %c0_29 = arith.constant 0 : index
    %c0_30 = arith.constant 0 : index
    %72 = vector.load %arg7[%c0_29, %c0_30] : memref<8x32xf32, #tpu.memory_space<vmem>>, vector<8x32xf32>
    %c0_31 = arith.constant 0 : index
    %c0_32 = arith.constant 0 : index
    %73 = vector.load %arg4[%c0_31, %c0_32] : memref<32x32xf32, #tpu.memory_space<vmem>>, vector<32x32xf32>
    %cst_33 = arith.constant dense<0.000000e+00> : vector<8x32xf32>
    %74 = tpu.matmul %72, %73, %cst_33 {dimension_numbers = #tpu.dot_dimension_numbers<[1], [0], [0], [1], [0, 0, 1, 1], [], []>} : vector<8x32xf32>, vector<32x32xf32>, vector<8x32xf32> -> vector<8x32xf32>
    %c0_34 = arith.constant 0 : index
    %c0_35 = arith.constant 0 : index
    %75 = vector.load %arg5[%c0_34, %c0_35] : memref<1x32xf32, #tpu.memory_space<vmem>>, vector<1x32xf32>
    %76 = vector.broadcast %75 : vector<1x32xf32> to vector<8x32xf32>
    %77 = arith.addf %74, %76 : vector<8x32xf32>
    %c0_36 = arith.constant 0 : index
    %c0_37 = arith.constant 0 : index
    %c0_38 = arith.constant 0 : index
    %78 = vector.load %arg6[%c0_36, %c0_37, %c0_38] : memref<1x8x32xf32, #tpu.memory_space<vmem>>, vector<1x8x32xf32>
    %79 = vector.shape_cast %78 : vector<1x8x32xf32> to vector<8x32xf32>
    %80 = vector.shape_cast %77 : vector<8x32xf32> to vector<1x8x32xf32>
    tpu.vector_store %arg6[%c0_36, %c0_37, %c0_38], %80 {strides = array<i32>} : memref<1x8x32xf32, #tpu.memory_space<vmem>>, vector<1x8x32xf32>,
    return
  }
  func.func @transform_0(%arg0: i32) -> (i32, i32, i32) {
    %c0_i32 = arith.constant 0 : i32
    %c0_i32_0 = arith.constant 0 : i32
    %c0_i32_1 = arith.constant 0 : i32
    return %arg0, %c0_i32, %c0_i32_0 : i32, i32, i32
  }
  func.func @transform_1(%arg0: i32) -> (i32, i32, i32) {
    %c0_i32 = arith.constant 0 : i32
    %c0_i32_0 = arith.constant 0 : i32
    %c0_i32_1 = arith.constant 0 : i32
    return %arg0, %c0_i32, %c0_i32_0 : i32, i32, i32
  }
  func.func @transform_2(%arg0: i32) -> (i32, i32, i32) {
    %c0_i32 = arith.constant 0 : i32
    %c0_i32_0 = arith.constant 0 : i32
    %c0_i32_1 = arith.constant 0 : i32
    return %arg0, %c0_i32, %c0_i32_0 : i32, i32, i32
  }
  func.func @transform_3(%arg0: i32) -> (i32, i32) {
    %c0_i32 = arith.constant 0 : i32
    %c0_i32_0 = arith.constant 0 : i32
    %c0_i32_1 = arith.constant 0 : i32
    return %c0_i32, %c0_i32_0 : i32, i32
  }
  func.func @transform_4(%arg0: i32) -> (i32, i32) {
    %c0_i32 = arith.constant 0 : i32
    %c0_i32_0 = arith.constant 0 : i32
    %c0_i32_1 = arith.constant 0 : i32
    return %c0_i32, %c0_i32_0 : i32, i32
  }
  func.func @transform_5(%arg0: i32) -> (i32, i32, i32) {
    %c0_i32 = arith.constant 0 : i32
    %c0_i32_0 = arith.constant 0 : i32
    %c0_i32_1 = arith.constant 0 : i32
    return %arg0, %c0_i32, %c0_i32_0 : i32, i32, i32
  }
}

</mosaic_0001>

<bundles_post_ra>
// kernel: tpu_custom_call.1
= control target key start
LH: loop header
LB: loop body
LE: loop exit
PB: predicated region body
PF: predicated region fallthrough
CT: control target
= control target key end

     0   :  { %s1969_s0 = inlined_call_operand.hbm [shape: f32[2,8,32], index: 0, kind: input, shape index: {}]   ;;  %s1970_s1 = inlined_call_operand.hbm [shape: f32[2,8,32], index: 1, kind: input, shape index: {}]   ;;  %s1971_s2 = inlined_call_operand.hbm [shape: f32[2,8,8], index: 2, kind: input, shape index: {}]   ;;  %s1972_s3 = inlined_call_operand.hbm [shape: f32[32,32], index: 3, kind: input, shape index: {}]   ;;  %s1973_s4 = inlined_call_operand.vmem [shape: f32[1,32], index: 4, kind: input, shape index: {}]   ;;  %s1974_s5 = inlined_call_operand.hbm [shape: f32[2,8,32], index: 5, kind: output, shape index: {}]  }
   0x1   :  { %1987 = sst [smem:[#allocation21_spill]] %s1970_s1 }
   0x2   :  { %1988 = sst [smem:[#allocation22_spill]] %s1974_s5 }
   0x3   :  { %10 = vsyncpa [#allocation4], 0 }
   0x4   :  { %12 = vsyncpa [#allocation4 + $0x1], 0 }
   0x5   :  { %13 = vsyncpa [#allocation7], 0 }
   0x6   :  { %15 = vsyncpa [#allocation7 + $0x1], 0 }
   0x7   :  { %16 = vsyncpa [#allocation10], 0 }
   0x8   :  { %17 = vsyncpa [#allocation5], 0 }
   0x9   :  { %19 = vsyncpa [#allocation5 + $0x1], 0  ;;  %s1651_s18 = smov 0   ;;  %s1653_s19 = smov 0  }
   0xa   :  { %s1655_s20 = smov 0   ;;  %s1657_s21 = smov 0  }
   0xb LB: > { %1989 = sst [smem:[#allocation16_spill]] %s1592_s18  ;;  %s1672_s22 = sadd.s32 1, %s1604_s21   ;;  %s1604_s21 = sphi %s1657_s21, %s2015_s21   ;;  %s1600_s20 = sphi %s1655_s20, %s2019_s20   ;;  %s1596_s19 = sphi %s1653_s19, %s2018_s19   ;;  %s1592_s18 = sphi %s1651_s18, %s2017_s18  }
   0xc   : > { %1990 = sst [smem:[#allocation17_spill]] %s1604_s21  ;;  %s32_s23 = sadd.s32 1, %s1600_s20 }
   0xd   : > { %1991 = sst [smem:[#allocation18_spill]] %s1672_s22  ;;  %s29_s24 = ssub.s32 %s1604_s21, %s1672_s22 }
   0xe   : > { %p1975_p0 = scmp.ne.s32.totalorder %s1600_s20, %s1596_s19  ;;  %p30_p1 = scmp.eq.s32.totalorder %s29_s24, 0 }
   0xf   : > { %p40_p2 = scmp.eq.s32.totalorder %s1604_s21, 0  ;;  %p1360_p4 = scmp.lt.s32.totalorder %s1604_s21, 2 }
  0x10   : > { %s1683_s25 = scalar_select %p30_p1, %s1600_s20, %s32_s23  }
  0x11   : > { %p41_p5 = por %p40_p2, %p1975_p0  ;;  %s1976_s26 = sand.u32 1, %s1600_s20  }
  0x12   : > { %1992 = sst [smem:[#allocation19_spill]] %s1683_s25  ;;  %s1691_s27 = sshll.u32 %s1976_s26, 3 }
  0x13   : > { %s1694_s28 = sshll.u32 %s1604_s21, 7  ;;  %p1696_p6 = pnand %p1360_p4, %p41_p5 }
  0x14   : > { %s223_s30 = sand.u32 1, %s1604_s21   ;;  %s1994_s1 = sld [smem:[#allocation21_spill]] }
  0x15   : > { %s227_s9 = scalar_lea.vmem [#allocation6], %s1691_s27  ;;  %s1708_s11 = scalar_lea.sflag [#allocation7], %s223_s30 }
  0x16   : > { %s234_s10 = sshll.u32 %s227_s9, 4  ;;  %p1714_p8 = pneg %p1696_p6  ;;  %s235_s10 = int_to_ptr.vmem [resolvable:$true] %s234_s10 }
  0x1a   : > { %s1705_s8 = scalar_lea.hbm %s1994_s1, %s1694_s28  ;;  %s1427_s16 = scalar_lea.hbm %s1994_s1, 256 }
  0x1b   : > { %s1422_s12 = scalar_lea.hbm %s1705_s8, 128  ;;  %p1428_p11 = scmp.lt.s32.totalorder %s1705_s8, %s1994_s1 }
  0x1c   : > { %p1423_p7 = scmp.ne.s32.totalorder %s1705_s8, %s1422_s12  ;;  %p1429_p12 = scmp.lt.s32.totalorder %s1427_s16, %s1422_s12 }
  0x1e   : > { %p1425_p9 = pnand %p1714_p8, %p1423_p7  ;;  %p1430_p13 = por %p1429_p12, %p1428_p11 }
  0x20   : > { %p1426_p10 = pneg %p1425_p9 }
  0x22   : > { %p1431_p1 = pnand %p1430_p13, %p1426_p10 }
  0x24   : > { %1434 = shalt.err (!%p1431_p1)
}
  0x25   : > { %s1435_s24 = scalar_lea.vmem %s235_s10, 128  ;;  %s1606_s30 = smov [#allocation6]  }
  0x26   : > { %p1436_p2 = scmp.ne.s32.totalorder %s235_s10, %s1435_s24  ;;  %s1440_s6 = sshll.u32 %s1606_s30, 4  ;;  %s1441_s6 = int_to_ptr.vmem [resolvable:$false] %s1440_s6 }
  0x27   : > { %s1442_s7 = scalar_lea.vmem %s1441_s6, 256  ;;  %p1443_p7 = scmp.lt.s32.totalorder %s235_s10, %s1441_s6 }
  0x28   : > { %p1438_p4 = pnand %p1436_p2, %p1714_p8  ;;  %p1444_p9 = scmp.lt.s32.totalorder %s1442_s7, %s1435_s24 }
  0x2a   : > { %p1439_p5 = pneg %p1438_p4  ;;  %p1445_p3 = por %p1444_p9, %p1443_p7 }
  0x2c   : > { %p1446_p0 = pnand %p1445_p3, %p1439_p5 }
  0x2e   : > { %1449 = shalt.err (!%p1446_p0)
}
  0x2f   : > { %1351 = dma.hbm_to_vmem [thread:$0]  (!%p1696_p6), %s1705_s8, 128, %s235_s10, %s1708_s11  }
  0x30   : > { %s1734_s9 = sadd.s32 4294967295, %s1604_s21   ;;  %s1223_s12 = sadd.s32 4294967294, %s1604_s21  }
  0x31   : > { %p45_p0 = scmp.ne.s32.totalorder %s1596_s19, %s1592_s18  ;;  %p1977_p3 = scmp.eq.s32.totalorder %s1734_s9, 0 }
  0x32   : > { %p163_p10 = scmp.eq.s32.totalorder %s1734_s9, 1  ;;  %p169_p11 = scmp.eq.s32.totalorder %s1223_s12, 1 }
  0x33   : > { %p1743_p12 = por %p1977_p3, %p45_p0  ;;  %p1224_p13 = scmp.ge.s32.totalorder %s1604_s21, 1 }
  0x34   : > { %p1997_p1 = scmp.ne.s32.totalorder %s1600_s20, %s1596_s19  ;;  %p1755_p4 = por %p169_p11, %p45_p0 }
  0x35   : > { %s1996_s14 = scalar_select %p1743_p12, 1, 0 }
  0x36   : > { %p1751_p2 = por %p163_p10, %p1997_p1  ;;  %p176_p5 = scmp.lt.s32.totalorder %s1604_s21, 3 }
  0x37   : > { %s1999_s10 = scalar_select %p1755_p4, 1, 0 }
  0x38   : > { %s1998_s8 = scalar_select %p1751_p2, 1, 0 }
  0x39   : > { %2000 = sst [smem:[#allocation20_spill]] %s1999_s10  ;;  %p1760_p7 = pnand %p1224_p13, %p176_p5 }
  0x3a   : > { %s1607_s16 = smov [#allocation9]   ;;  %s1770_s30 = scalar_lea.hbm %s1969_s0, %s1694_s28 }
  0x3b   : > { %s2001_s15 = scalar_select %p1760_p7, 1, 0 }
  0x3c   : > { %s188_s17 = sshll.u32 %s1607_s16, 4  ;;  %p1341_p9 = pneg %p1760_p7  ;;  %s189_s17 = int_to_ptr.vmem [resolvable:$true] %s188_s17 }
  0x3d   : > { %s209_s7 = scalar_lea.vmem [#allocation3], %s1691_s27  ;;  %s1785_s1 = scalar_lea.hbm %s1971_s2, %s1694_s28 }
  0x3e   : > { %p1774_p0 = pnand %p1341_p9, %p1977_p3  ;;  %s216_s12 = sshll.u32 %s209_s7, 4  ;;  %s1779_s12 = int_to_ptr.vmem [resolvable:$true] %s216_s12 }
  0x3f   : > { %s1461_s23 = scalar_lea.vmem %s189_s17, 512  ;;  %p1469_p5 = scmp.lt.s32.totalorder %s189_s17, %s189_s17 }
  0x40   : > { %p1452_p10 = pneg %p1774_p0  ;;  %p1462_p11 = scmp.ne.s32.totalorder %s189_s17, %s1461_s23 }
  0x41   : > { %p1470_p9 = scmp.lt.s32.totalorder %s1461_s23, %s1461_s23 }
  0x42   : > { %p1464_p13 = pnand %p1462_p11, %p1452_p10 }
  0x43   : > { %p1471_p3 = por %p1470_p9, %p1469_p5 }
  0x44   : > { %p1465_p1 = pneg %p1464_p13 }
  0x46   : > { %p1472_p4 = pnand %p1471_p3, %p1465_p1 }
  0x48   : > { %1475 = shalt.err (!%p1472_p4)
}
  0x49   : > { %s1608_s24 = smov 128   ;;  %s1609_s26 = smov 8  }
  0x4a   : > { %1344 = dma.hbm_to_vmem [thread:$0]  (!%p1774_p0), %s1972_s3, 512, %s189_s17, [#allocation10], %s1608_s24, %s1608_s24, %s1609_s26  }
  0x4b   : > { %s2003_s16 = sand.u32 1, %s1600_s20   ;;  %s1476_s22 = scalar_lea.hbm %s1770_s30, 128 }
  0x4c   : > { %s206_s25 = scalar_lea.sflag [#allocation4], %s2003_s16  ;;  %p1477_p10 = scmp.ne.s32.totalorder %s1770_s30, %s1476_s22 }
  0x4d   : > { %s1481_s10 = scalar_lea.hbm %s1969_s0, 256  ;;  %p1482_p11 = scmp.lt.s32.totalorder %s1770_s30, %s1969_s0 }
  0x4e   : > { %p1479_p3 = pnand %p1477_p10, %p1714_p8  ;;  %p1483_p13 = scmp.lt.s32.totalorder %s1481_s10, %s1476_s22 }
  0x50   : > { %p1480_p4 = pneg %p1479_p3  ;;  %p1484_p1 = por %p1483_p13, %p1482_p11 }
  0x52   : > { %p1485_p5 = pnand %p1484_p1, %p1480_p4 }
  0x54   : > { %1488 = shalt.err (!%p1485_p5)
}
  0x55   : > { %s1489_s17 = scalar_lea.vmem %s1779_s12, 128  ;;  %s1610_s6 = smov [#allocation3]  }
  0x56   : > { %p1490_p0 = scmp.ne.s32.totalorder %s1779_s12, %s1489_s17  ;;  %s1494_s21 = sshll.u32 %s1610_s6, 4  ;;  %s1495_s21 = int_to_ptr.vmem [resolvable:$false] %s1494_s21 }
  0x57   : > { %s1496_s24 = scalar_lea.vmem %s1495_s21, 256  ;;  %p1497_p3 = scmp.lt.s32.totalorder %s1779_s12, %s1495_s21 }
  0x58   : > { %p1492_p9 = pnand %p1490_p0, %p1714_p8  ;;  %p1498_p2 = scmp.lt.s32.totalorder %s1496_s24, %s1489_s17 }
  0x5a   : > { %p1493_p10 = pneg %p1492_p9  ;;  %p1499_p12 = por %p1498_p2, %p1497_p3 }
  0x5c   : > { %p1500_p7 = pnand %p1499_p12, %p1493_p10 }
  0x5e   : > { %1503 = shalt.err (!%p1500_p7)
}
  0x5f   : > { %1348 = dma.hbm_to_vmem [thread:$0]  (!%p1696_p6), %s1770_s30, 128, %s1779_s12, %s206_s25  }
  0x60   : > { %s245_s5 = scalar_lea.vmem [#allocation8], %s1691_s27  ;;  %s1504_s22 = scalar_lea.hbm %s1785_s1, 128 }
  0x61   : > { %s252_s18 = sshll.u32 %s245_s5, 4  ;;  %p1505_p4 = scmp.ne.s32.totalorder %s1785_s1, %s1504_s22  ;;  %s253_s18 = int_to_ptr.vmem [resolvable:$true] %s252_s18 }
  0x62   : > { %s1509_s28 = scalar_lea.hbm %s1971_s2, 256  ;;  %p1510_p12 = scmp.lt.s32.totalorder %s1785_s1, %s1971_s2 }
  0x63   : > { %p1507_p11 = pnand %p1505_p4, %p1714_p8  ;;  %p1511_p7 = scmp.lt.s32.totalorder %s1509_s28, %s1504_s22 }
  0x65   : > { %p1508_p2 = pneg %p1507_p11  ;;  %p1512_p13 = por %p1511_p7, %p1510_p12 }
  0x67   : > { %p1513_p1 = pnand %p1512_p13, %p1508_p2 }
  0x69   : > { %1516 = shalt.err (!%p1513_p1)
}
  0x6a   : > { %s1517_s25 = scalar_lea.vmem %s253_s18, 128  ;;  %s1611_s27 = smov [#allocation8]  }
  0x6b   : > { %p1518_p5 = scmp.ne.s32.totalorder %s253_s18, %s1517_s25  ;;  %s1522_s30 = sshll.u32 %s1611_s27, 4  ;;  %s1523_s30 = int_to_ptr.vmem [resolvable:$false] %s1522_s30 }
  0x6c   : > { %s1524_s12 = scalar_lea.vmem %s1523_s30, 256  ;;  %p1525_p10 = scmp.lt.s32.totalorder %s253_s18, %s1523_s30 }
  0x6d   : > { %p1520_p0 = pnand %p1518_p5, %p1714_p8  ;;  %p1526_p3 = scmp.lt.s32.totalorder %s1524_s12, %s1517_s25 }
  0x6f   : > { %p1521_p9 = pneg %p1520_p0  ;;  %p1527_p4 = por %p1526_p3, %p1525_p10 }
  0x71   : > { %p1528_p11 = pnand %p1527_p4, %p1521_p9 }
  0x73   : > { %1531 = shalt.err (!%p1528_p11)
}
  0x74   : > { %1354 = dma.hbm_to_vmem [thread:$0]  (!%p1696_p6), %s1785_s1, 128, %s253_s18, %s1708_s11  }
  0x75   : > { %p2004_p2 = scmp.ne.s32.totalorder %s2001_s15, 0 }
  0x76   : > { %s1837_s13 = sand.u32 (!%p2004_p2), 1, %s1596_s19   ;;  %p2005_p8 = scmp.ne.s32.totalorder (!%p2004_p2), %s1996_s14, 0 }
  0x77   : > { %261 = sbr.rel (%p2004_p2) target bundleno = 1292 (0x50c), region = 40  ;;  %s1840_s23 = sshll.u32 (!%p2004_p2), %s1837_s13, 3 }
  0x78   : > { %s264_s17 = scalar_lea.sflag (!%p2004_p2), [#allocation4], %s1837_s13  ;;  %s267_s6 = scalar_lea.vmem (!%p2004_p2), [#allocation3], %s1840_s23 }
  0x7c   : > { %1575 = dma.done.wait (%p2005_p8), %s264_s17, 128  }
  0x7d   : > { %1577 = vsyncadd (%p2005_p8), %s264_s17, 4294967168  ;;  %s272_s1 = sand.u32 1, %s1734_s9   ;;  %s276_s11 = scalar_lea.vmem [#allocation6], %s1840_s23 }
  0x7e   : > { %s273_s29 = scalar_lea.sflag [#allocation7], %s272_s1 }
  0x7f   : > { %1579 = dma.done.wait (%p2005_p8), %s273_s29, 256  }
  0x80   : > { %1581 = vsyncadd (%p2005_p8), %s273_s29, 4294967040  ;;  %s285_s15 = scalar_lea.vmem [#allocation8], %s1840_s23  ;;  %p2006_p6 = scmp.eq.s32.totalorder %s1734_s9, 0 }
  0x82   : > { %1583 = dma.done.wait (%p2006_p6), [#allocation10], 512   ;;  %p2007_p12 = pmov %p2006_p6 }
  0x83   : > { %v1612_v0 = vmov 0.0   ;;  %vm1613_vm0 = vmmov 0   ;;  %vm330_vm1 = vcmask 64512   ;;  %v326_v1 = vld [vmem:[%s276_s11] sm:$0xff]  ;;  %v328_v2 = vld [vmem:[%s267_s6] sm:$0xff]  ;;  %s1614_s14 = smov 120  }
  0x84   : > { %1585 = vsyncadd (%p2007_p12), [#allocation10], 4294966784  ;;  %1278 = vmatprep.subr.mxu0 %v1612_v0  ;;  %1280 = vmatprep.mubr.msk.f32.mxu0 %vm1613_vm0, %v1612_v0  ;;  %v329_v3 = vmul.f32 0.17677669, %v328_v2  ;;  %s1615_s21 = smov 112   ;;  %s1616_s24 = smov 104  }
  0x85   : > { %1288 = vmatprep.subr.mxu1 %v1612_v0  ;;  %1290 = vmatprep.mubr.msk.f32.mxu1 %vm1613_vm0, %v1612_v0  ;;  %v327_v10 = vld [vmem:[%s285_s15] sm:$0xff]  ;;  %v1001_v63 = vld [vmem:[#allocation9 + $0x8] sm:$0xff]  ;;  %v1000_v2 = vld [vmem:[#allocation9] sm:$0xff]  ;;  %s1617_s5 = smov 8   ;;  %s1618_s18 = smov 16   ;;  %vm659_vm2 = vcmask 130112  }
  0x86   : > { %494 = vrot.lane.b32.xlu0 %v326_v1, %s1614_s14  ;;  %1279 = vmatpush3.xpose.msk.msra.mxu0 %vm330_vm1, %v326_v1  ;;  %v1003_v61 = vld [vmem:[#allocation9 + $0x18] sm:$0xff]  ;;  %v1002_v62 = vld [vmem:[#allocation9 + $0x10] sm:$0xff]  ;;  %s1619_s22 = smov 24   ;;  %vm828_vm3 = vcmask 195712   ;;  %vm997_vm4 = vcmask 261312   ;;  %vm1011_vm5 = vcmask 261120  }
  0x87   : > { %663 = vrot.lane.b32.xlu1 %v326_v1, %s1615_s21  ;;  %1283 = vmatprep.subr.mxu0 %v1612_v0  ;;  %s1254_s28 = sshll.u32 %s1734_s9, 7  ;;  %s325_s7 = scalar_lea.vmem [#allocation11], %s1840_s23 }
  0x88   : > { %s1100_s16 = sshll.u32 %s325_s7, 4  ;;  %s2008_s30 = sld [smem:[#allocation22_spill]]  ;;  %s1101_s16 = int_to_ptr.vmem [resolvable:$true] %s1100_s16 }
  0x89   : > { %1281 = vmatmul.mubr.msk.f32.vlgmr.msra.gmra.mxu0 %vm330_vm1, %v329_v3  ;;  %s1087_s17 = scalar_lea.sflag [#allocation5], %s1837_s13  ;;  %s1532_s6 = scalar_lea.vmem %s1101_s16, 128 }
  0x8a   : > { %492 = vrot.lane.b32.xlu0 %v329_v3, %s1614_s14  ;;  %1284 = vmatpush3.msra.mxu0 %v326_v1  ;;  %p1533_p7 = scmp.ne.s32.totalorder %s1101_s16, %s1532_s6  ;;  %p2009_p13 = scmp.ne.s32.totalorder %s1998_s8, 0 }
  0x8b   : > { %661 = vrot.lane.b32.xlu1 %v329_v3, %s1615_s21  ;;  %1285 = vmatprep.mubr.msk.f32.mxu0 %vm1613_vm0, %v1612_v0  ;;  %s1620_s1 = smov [#allocation11]  }
  0x8c   : > { %1293 = vmatprep.subr.mxu0 %v1612_v0  ;;  %p1534_p1 = pnand %p1533_p7, %p2009_p13  ;;  %s1536_s9 = sshll.u32 %s1620_s1, 4  ;;  %s1537_s9 = int_to_ptr.vmem [resolvable:$false] %s1536_s9 }
  0x8d   : > { %s1538_s23 = scalar_lea.vmem %s1537_s9, 256  ;;  %p1539_p0 = scmp.lt.s32.totalorder %s1101_s16, %s1537_s9 }
  0x8e   : > { %832 = vrot.lane.b32.xlu0 %v326_v1, %s1616_s24  ;;  %s1932_s12 = scalar_lea.hbm %s2008_s30, %s1254_s28  ;;  %p1535_p5 = pneg %p1534_p1 }
  0x8f   : > { %830 = vrot.lane.b32.xlu1 %v329_v3, %s1616_s24  ;;  %p1540_p9 = scmp.lt.s32.totalorder %s1538_s23, %s1532_s6 }
  0x91   : > { %p1541_p10 = por %p1540_p9, %p1539_p0 }
  0x93   : > { %p1542_p3 = pnand %p1541_p10, %p1535_p5 }
  0xf8   : > { %v1871_v4 = vpop.permute.xlu0 %494 }
  0xf9   : > { %1289 = vmatpush3.xpose.msk.msra.mxu1 %vm330_vm1, %v1871_v4  ;;  %v1875_v5 = vpop.permute.xlu1 %663 }
  0xfa   : > { %1298 = vmatprep.subr.mxu1 %v1612_v0 }
  0xfc   : > { %v493_v6 = vpop.permute.xlu0 %492 }
  0xfd   : > { %1291 = vmatmul.mubr.msk.f32.vlgmr.msra.gmra.mxu1 %vm330_vm1, %v493_v6  ;;  %v662_v7 = vpop.permute.xlu1 %661 }
  0xfe   : > { %1299 = vmatpush3.xpose.msk.msra.mxu1 %vm330_vm1, %v1875_v5  ;;  %1300 = vmatprep.mubr.msk.f32.mxu1 %vm1613_vm0, %v1612_v0 }
  0xff   : > { %1308 = vmatprep.subr.mxu1 %v1612_v0 }
 0x100   : > { %v1884_v8 = vpop.permute.xlu0 %832 }
 0x101   : > { %1301 = vmatmul.mubr.msk.f32.vlgmr.msra.gmra.mxu1 %vm330_vm1, %v662_v7  ;;  %v831_v9 = vpop.permute.xlu1 %830 }
 0x102   : > { %1309 = vmatpush3.xpose.msk.msra.mxu1 %vm330_vm1, %v1884_v8  ;;  %1310 = vmatprep.mubr.msk.f32.mxu1 %vm1613_vm0, %v1612_v0 }
 0x103   : > { %1318 = vmatprep.subr.mxu1 %v1612_v0 }
 0x105   : > { %1311 = vmatmul.mubr.msk.f32.vlgmr.msra.gmra.mxu1 %vm330_vm1, %v831_v9 }
 0x106   : > { %1326 = vmatprep.mubr.msk.f32.mxu1 %vm1613_vm0, %v1612_v0  ;;  %1319 = vmatpush3.msra.mxu1 %v1003_v61 }
 0x107   : > { %1320 = vmatprep.subr.mxu1 %v1612_v0 }
 0x108   : > { %1321 = vmatpush3.msra.mxu1 %v1002_v62 }
 0x109   : > { %1322 = vmatprep.subr.mxu1 %v1612_v0 }
 0x10a   : > { %1323 = vmatpush3.msra.mxu1 %v1001_v63 }
 0x10b   : > { %1324 = vmatprep.subr.mxu1 %v1612_v0 }
 0x10c   : > { %1325 = vmatpush3.msra.mxu1 %v1000_v2 }
 0x149   : > { %v403_v11 = vpop.f32.mrf.mxu0 }
 0x14a   : > { %v404_v12 = vadd.f32 %v403_v11, %v327_v10  ;;  %v1251_v11 = vld [vmem:[%s1973_s4] ss:$0 sm:$0xff] }
 0x14b   : > { %v1282_v13 = vpop.f32.mrf.mxu0 }
 0x14c   : > { %v407_v14 = vsel %vm330_vm1, %v404_v12, -inf }
 0x14d   : > { %408 = vmax.xlane.f32.xlu0 %v407_v14 }
 0x1bd   : > { %v566_v15 = vpop.f32.mrf.mxu1 }
 0x1be   : > { %v567_v16 = vadd.f32 %v566_v15, %v327_v10 }
 0x1bf   : > { %v1292_v17 = vpop.f32.mrf.mxu1 }
 0x1c0   : > { %v570_v18 = vsel %vm330_vm1, %v567_v16, -inf }
 0x1c1   : > { %571 = vmax.xlane.f32.xlu1 %v570_v18  ;;  %v735_v19 = vpop.f32.mrf.mxu1 }
 0x1c2   : > { %v736_v20 = vadd.f32 %v735_v19, %v327_v10 }
 0x1c3   : > { %v1302_v21 = vpop.f32.mrf.mxu1 }
 0x1c4   : > { %v739_v22 = vsel %vm330_vm1, %v736_v20, -inf }
 0x1c5   : > { %v904_v23 = vpop.f32.mrf.mxu1  ;;  %740 = vmax.xlane.f32.xlu0 %v739_v22 }
 0x1c6   : > { %v905_v24 = vadd.f32 %v904_v23, %v327_v10 }
 0x1c7   : > { %v1312_v25 = vpop.f32.mrf.mxu1 }
 0x1c8   : > { %v908_v26 = vsel %vm330_vm1, %v905_v24, -inf }
 0x1c9   : > { %909 = vmax.xlane.f32.xlu0 %v908_v26 }
 0x1d6   : > { %v409_v27 = vpop.xlane.xlu0 %408 }
 0x1d7   : > { %v410_v28 = vsub.f32 %v404_v12, %v409_v27 }
 0x1d9   : > { %v411_v29 = vmul.f32 1.442695, %v410_v28 }
 0x1db   : > { %1406 = vpow2.f32 %v411_v29 }
 0x1e8   : > { %v1407_v30 = vpop.eup %1406 }
 0x1e9   : > { %v413_v31 = vsel %vm330_vm1, %v1407_v30, 0.0 }
 0x1ea   : > { %414 = vadd.xlane.f32.xlu1 %v413_v31 }
 0x24a   : > { %v572_v32 = vpop.xlane.xlu1 %571 }
 0x24b   : > { %v573_v33 = vsub.f32 %v567_v16, %v572_v32 }
 0x24d   : > { %v574_v34 = vmul.f32 1.442695, %v573_v33 }
 0x24e   : > { %v741_v35 = vpop.xlane.xlu0 %740 }
 0x24f   : > { %1408 = vpow2.f32 %v574_v34  ;;  %v742_v36 = vsub.f32 %v736_v20, %v741_v35 }
 0x251   : > { %v743_v37 = vmul.f32 1.442695, %v742_v36 }
 0x252   : > { %v910_v38 = vpop.xlane.xlu0 %909 }
 0x253   : > { %1410 = vpow2.f32 %v743_v37  ;;  %v911_v39 = vsub.f32 %v905_v24, %v910_v38 }
 0x255   : > { %v912_v40 = vmul.f32 1.442695, %v911_v39 }
 0x257   : > { %1412 = vpow2.f32 %v912_v40 }
 0x25c   : > { %v1409_v41 = vpop.eup %1408 }
 0x25d   : > { %v576_v42 = vsel %vm330_vm1, %v1409_v41, 0.0 }
 0x25e   : > { %577 = vadd.xlane.f32.xlu0 %v576_v42 }
 0x260   : > { %v1411_v43 = vpop.eup %1410 }
 0x261   : > { %v745_v44 = vsel %vm330_vm1, %v1411_v43, 0.0 }
 0x262   : > { %746 = vadd.xlane.f32.xlu1 %v745_v44 }
 0x264   : > { %v1413_v45 = vpop.eup %1412 }
 0x265   : > { %v914_v46 = vsel %vm330_vm1, %v1413_v45, 0.0 }
 0x266   : > { %915 = vadd.xlane.f32.xlu0 %v914_v46 }
 0x273   : > { %v415_v47 = vpop.xlane.xlu1 %414 }
 0x274   : > { %1414 = vrcp.f32 %v415_v47 }
 0x281   : > { %v1415_v48 = vpop.eup %1414 }
 0x282   : > { %v417_v49 = vmul.f32 %v1415_v48, %v1407_v30 }
 0x284   : > { %1286 = vmatmul.mubr.msk.f32.vlgmr.msra.gmra.mxu0 %vm330_vm1, %v417_v49 }
 0x285   : > { %1294 = vmatpush3.msra.mxu0 %v1871_v4  ;;  %1295 = vmatprep.mubr.msk.f32.mxu0 %vm1613_vm0, %v1612_v0 }
 0x286   : > { %1303 = vmatprep.subr.mxu0 %v1612_v0 }
 0x2e7   : > { %v578_v50 = vpop.xlane.xlu0 %577 }
 0x2e8   : > { %1416 = vrcp.f32 %v578_v50 }
 0x2eb   : > { %v747_v51 = vpop.xlane.xlu1 %746 }
 0x2ec   : > { %1418 = vrcp.f32 %v747_v51 }
 0x2ef   : > { %v916_v52 = vpop.xlane.xlu0 %915 }
 0x2f0   : > { %1420 = vrcp.f32 %v916_v52 }
 0x2f5   : > { %v1417_v53 = vpop.eup %1416 }
 0x2f6   : > { %v580_v54 = vmul.f32 %v1417_v53, %v1409_v41 }
 0x2f8   : > { %1296 = vmatmul.mubr.msk.f32.vlgmr.msra.gmra.mxu0 %vm330_vm1, %v580_v54 }
 0x2f9   : > { %v1419_v55 = vpop.eup %1418  ;;  %1304 = vmatpush3.msra.mxu0 %v1875_v5  ;;  %1305 = vmatprep.mubr.msk.f32.mxu0 %vm1613_vm0, %v1612_v0 }
 0x2fa   : > { %1313 = vmatprep.subr.mxu0 %v1612_v0  ;;  %v749_v56 = vmul.f32 %v1419_v55, %v1411_v43 }
 0x2fc   : > { %1306 = vmatmul.mubr.msk.f32.vlgmr.msra.gmra.mxu0 %vm330_vm1, %v749_v56 }
 0x2fd   : > { %v1421_v57 = vpop.eup %1420  ;;  %1314 = vmatpush3.msra.mxu0 %v1884_v8  ;;  %1315 = vmatprep.mubr.msk.f32.mxu0 %vm1613_vm0, %v1612_v0 }
 0x2fe   : > { %v918_v58 = vmul.f32 %v1421_v57, %v1413_v45 }
 0x300   : > { %1316 = vmatmul.mubr.msk.f32.vlgmr.msra.gmra.mxu0 %vm330_vm1, %v918_v58 }
 0x344   : > { %v487_v59 = vpop.f32.mrf.mxu0 }
 0x345   : > { %491 = vst.msk [vmem:[#allocation2] sm:$0xff] %vm330_vm1, %v487_v59 }
 0x346   : > { %v1287_v60 = vpop.f32.mrf.mxu0 }
 0x3b8   : > { %v651_v1 = vpop.f32.mrf.mxu0 }
 0x3b9   : > { %656 = vrot.lane.b32.xlu1 %v651_v1, %s1617_s5 }
 0x3ba   : > { %v1297_v3 = vpop.f32.mrf.mxu0 }
 0x3bc   : > { %v820_v4 = vpop.f32.mrf.mxu0 }
 0x3bd   : > { %825 = vrot.lane.b32.xlu0 %v820_v4, %s1618_s18 }
 0x3be   : > { %v1307_v5 = vpop.f32.mrf.mxu0 }
 0x3c0   : > { %v989_v6 = vpop.f32.mrf.mxu0 }
 0x3c1   : > { %994 = vrot.lane.b32.xlu1 %v989_v6, %s1619_s22 }
 0x3c2   : > { %v1317_v7 = vpop.f32.mrf.mxu0 }
 0x42b   : > { %v657_v8 = vpop.permute.xlu1 %656 }
 0x42c   : > { %660 = vst.msk [vmem:[#allocation2] sm:$0xff] %vm659_vm2, %v657_v8 }
 0x42f   : > { %v826_v9 = vpop.permute.xlu0 %825 }
 0x430   : > { %829 = vst.msk [vmem:[#allocation2] sm:$0xff] %vm828_vm3, %v826_v9 }
 0x433   : > { %v995_v0 = vpop.permute.xlu1 %994 }
 0x434   : > { %998 = vst.msk [vmem:[#allocation2] sm:$0xff] %vm997_vm4, %v995_v0 }
 0x43b   : > { %v999_v10 = vld [vmem:[#allocation2] sm:$0xff] }
 0x43c   : > { %1327 = vmatmul.mubr.msk.f32.vlgmr.msra.gmra.mxu1 %vm1011_vm5, %v999_v10 }
 0x4fc   : > { %v1081_v12 = vpop.f32.mrf.mxu1 }
 0x4fd   : > { %v1082_v13 = vadd.f32 %v1251_v11, %v1081_v12 }
 0x4fe   : > { %v1328_v14 = vpop.f32.mrf.mxu1 }
 0x4ff   : > { %1085 = vst.msk [vmem:[%s325_s7] sm:$0xff] %vm1011_vm5, %v1082_v13 }
 0x500   : > { %1545 = shalt.err (!%p1542_p3)
}
 0x501   : > { %s1546_s29 = scalar_lea.hbm %s1932_s12, 128  ;;  %s1550_s15 = scalar_lea.hbm %s2008_s30, 256 }
 0x502   : > { %p1547_p4 = scmp.ne.s32.totalorder %s1932_s12, %s1546_s29  ;;  %p1551_p8 = scmp.lt.s32.totalorder %s1932_s12, %s2008_s30 }
 0x503   : > { %p1552_p6 = scmp.lt.s32.totalorder %s1550_s15, %s1546_s29 }
 0x504   : > { %p1548_p11 = pnand %p1547_p4, %p2009_p13 }
 0x505   : > { %p1553_p12 = por %p1552_p6, %p1551_p8 }
 0x506   : > { %p1549_p2 = pneg %p1548_p11 }
 0x508   : > { %p1554_p7 = pnand %p1553_p12, %p1549_p2 }
 0x50a   : > { %1557 = shalt.err (!%p1554_p7)
}
 0x50b   : > { %1339 = dma.vmem_to_hbm [thread:$0]  (%p2009_p13), %s1101_s16, 128, %s1932_s12, %s1087_s17  }
 0x50c PF: > { %s2010_s24 = sld [smem:[#allocation16_spill]] }
 0x50d   : > { %s2011_s5 = sld [smem:[#allocation20_spill]] }
 0x50e   : > { %s2012_s18 = sld [smem:[#allocation17_spill]] }
 0x512   : > { %s1112_s22 = sand.u32 1, %s2010_s24  }
 0x513   : > { %p2013_p1 = scmp.ne.s32.totalorder %s2011_s5, 0  ;;  %s1113_s10 = scalar_lea.sflag [#allocation5], %s1112_s22 }
 0x514   : > { %p2014_p5 = scmp.ge.s32.totalorder %s2012_s18, 2 }
 0x516   : > { %p1356_p0 = pnand %p2014_p5, %p2013_p1 }
 0x518   : > { %p1357_p9 = pneg %p1356_p0 }
 0x51a   : > { %1587 = dma.done.wait (%p1357_p9), %s1113_s10, 128  }
 0x51b   : > { %1589 = vsyncadd (%p1357_p9), %s1113_s10, 4294967168  ;;  %s2015_s21 = sld [smem:[#allocation18_spill]]  ;;  %s2017_s18 = smov %s1596_s19 }
 0x51c   : > { %s2016_s26 = sld [smem:[#allocation19_spill]]  ;;  %s2018_s19 = smov %s1600_s20 }
 0x521   : > { %p22_p10 = scmp.ge.s32.totalorder %s2015_s21, 4  }
 0x522   : > { %s2019_s20 = smov %s2016_s26 }
 0x523   :  { %24 = sbr.rel (!%p22_p10) target bundleno = 11 (0xb), region = 113 }
 0x528   :  { %1118 = vsyncpa [#allocation4], 1 }
 0x529   :  { %1120 = vsyncpa [#allocation4 + $0x1], 1 }
 0x52a   :  { %1121 = vsyncpa [#allocation7], 1 }
 0x52b   :  { %1123 = vsyncpa [#allocation7 + $0x1], 1 }
 0x52c   :  { %1124 = vsyncpa [#allocation10], 1 }
 0x52d   :  { %1125 = vsyncpa [#allocation5], 1 }
 0x52e   :  { %1127 = vsyncpa [#allocation5 + $0x1], 1 }

</bundles_post_ra>
